<compile_context>
chip_gen: v5e
topology: v5e:2x2
jax: 0.10.0
libtpu: 0.0.40
codegen_flags: <defaults>
</compile_context>

<pallas_src>
import math

import jax
import jax.numpy as jnp
from jax.experimental import pallas as pl
from jax.experimental.pallas import tpu as pltpu


# dot_general dimension numbers contracting the last dim of both operands
# (the "NT" pattern used by the official Pallas TPU flash-attention kernel).
_NT_DIMS = (((1,), (1,)), ((), ()))


def _discriminator_kernel(x_ref, w1_ref, b1_ref, w2_ref, b2_ref, w3_ref, b3_ref,
                          o_ref):
    # ---- Linear 1 + LeakyReLU(0.2) ------------------------------------------
    # x arrives as f32 (no extra wrapper HBM pass); cast to bf16 just before
    # the MXU, accumulate in f32.  The cast hides under the x DMA.
    x_bf = x_ref[...].astype(jnp.bfloat16)
    h1 = jnp.dot(x_bf, w1_ref[...], preferred_element_type=jnp.float32)
    h1 = h1 + b1_ref[...]                                   # [TILE_B, 2L]
    h1 = jnp.where(h1 > 0, h1, 0.2 * h1)

    # ---- Linear 2 + LeakyReLU(0.2): bf16 operands, f32 accumulation ---------
    h2 = jnp.dot(h1.astype(jnp.bfloat16), w2_ref[...],
                 preferred_element_type=jnp.float32)
    h2 = h2 + b2_ref[...]                                   # [TILE_B, L]
    h2 = jnp.where(h2 > 0, h2, 0.2 * h2)

    # ---- Linear 3 + Sigmoid, produced lane-dense as (1, TILE_B) -------------
    # w3_ref holds the single output row replicated on 8 sublanes; contracting
    # the latent dim of both operands yields per-row logits along lanes, so
    # the store below is a full-width lane-dense store.
    h3t = jax.lax.dot_general(w3_ref[...], h2.astype(jnp.bfloat16), _NT_DIMS,
                              preferred_element_type=jnp.float32)  # [8, TILE_B]
    logits = h3t[0:1, :] + b3_ref[...]                      # [1, TILE_B]
    o_ref[...] = jax.nn.sigmoid(logits).astype(o_ref.dtype)


def _round_up(x, m):
    return ((x + m - 1) // m) * m


def _choose_tile_b(batch, target):
    """Adaptive batch tile: 16-row rounding (bf16 sublane packing), minimal
    last-tile waste, >=2 tiles for large batches (v7x dual TensorCore)."""
    b16 = _round_up(batch, 16)
    if b16 <= 512:
        return b16                         # single small tile; overhead moot
    num_tiles = max(2, pl.cdiv(b16, target))
    return min(target, _round_up(pl.cdiv(b16, num_tiles), 256))


def discriminator_forward(img, params, *, target_tile_b=1024):
    """img: [B, C, H, W] float32; params: dict of transposed weights/biases."""
    B = img.shape[0]
    x = img.reshape(B, -1)                                  # torch .view(B, -1)
    D = x.shape[1]

    w1, b1 = params["w1"], params["b1"]                     # [D, 2L], [1, 2L]
    w2, b2 = params["w2"], params["b2"]                     # [2L, L], [1, L]
    w3, b3 = params["w3"], params["b3"]                     # [L, 1],  [1, 1]
    H1 = w1.shape[1]
    H2 = w2.shape[1]

    tile_b = _choose_tile_b(B, target_tile_b)
    num_tiles = pl.cdiv(B, tile_b)
    padded_B = num_tiles * tile_b          # only the OUTPUT is padded; the x
                                           # input stays ragged (no jnp.pad).

    # Small, one-time casts of the resident weights only (bf16 MXU path).
    w1_bf = w1.astype(jnp.bfloat16)
    w2_bf = w2.astype(jnp.bfloat16)
    # Replicate the (L,) third-layer weight row over 8 sublanes so the final
    # NT matmul has a well-shaped lhs tile (row 0 of the result is used).
    w3_rows = jnp.broadcast_to(w3.reshape(1, H2), (8, H2)).astype(jnp.bfloat16)

    grid_spec = pltpu.PrefetchScalarGridSpec(
        num_scalar_prefetch=0,
        grid=(num_tiles,),
        in_specs=[
            pl.BlockSpec((tile_b, D), lambda i: (i, 0)),    # streamed f32 acts
            pl.BlockSpec((D, H1), lambda i: (0, 0)),        # resident weights
            pl.BlockSpec((1, H1), lambda i: (0, 0)),
            pl.BlockSpec((H1, H2), lambda i: (0, 0)),
            pl.BlockSpec((1, H2), lambda i: (0, 0)),
            pl.BlockSpec((8, H2), lambda i: (0, 0)),
            pl.BlockSpec((1, 1), lambda i: (0, 0)),
        ],
        # Lane-dense output: one row of padded_B values; each grid step writes
        # a full-width (1, tile_b) slab.
        out_specs=pl.BlockSpec((1, tile_b), lambda i: (0, i)),
    )

    flops = 2 * padded_B * (D * H1 + H1 * H2 + H2)
    bytes_accessed = (x.size * 4 + w1_bf.size * 2 + w2_bf.size * 2
                      + w3_rows.size * 2 + b1.size * 4 + b2.size * 4 + 4
                      + padded_B * 4)

    # VMEM budget: double-buffered f32 x block + double-buffered bf16 weights
    # + f32/bf16 intermediates + headroom; capped at 48 MiB (safe on v7x's
    # 64 MiB physical VMEM, comfortable on v5e/v6e's 128 MiB).
    budget = (2 * tile_b * D * 4
              + 2 * (w1_bf.size + w2_bf.size + w3_rows.size) * 2
              + tile_b * (H1 + H2) * 8
              + (8 << 20))
    vmem_limit = int(min(48 << 20, max(32 << 20, budget)))

    out = pl.pallas_call(
        _discriminator_kernel,
        out_shape=jax.ShapeDtypeStruct((1, padded_B), jnp.float32),
        grid_spec=grid_spec,
        compiler_params=pltpu.CompilerParams(
            dimension_semantics=("parallel",),
            vmem_limit_bytes=vmem_limit,
        ),
        cost_estimate=pl.CostEstimate(
            flops=int(flops),
            transcendentals=int(padded_B),
            bytes_accessed=int(bytes_accessed),
        ),
    )(x, w1_bf, b1, w2_bf, b2, w3_rows, b3)

    # Keep this slice: ragged/padded batch rows carry unspecified values and
    # are discarded here (no cross-row reduction happens inside the kernel).
    return out[0, :B].reshape(B, 1)


def init_params(key, in_features, latent_dim):
    """Deterministic synthetic parameters (shapes match the nn.Linear layers),
    stored transposed as [in, out] so the kernel computes x @ W + b."""
    k1, k2, k3, k4, k5, k6 = jax.random.split(key, 6)
    h1, h2 = 2 * latent_dim, latent_dim
    scale = 0.02
    return {
        "w1": scale * jax.random.normal(k1, (in_features, h1), jnp.float32),
        "b1": scale * jax.random.normal(k2, (1, h1), jnp.float32),
        "w2": scale * jax.random.normal(k3, (h1, h2), jnp.float32),
        "b2": scale * jax.random.normal(k4, (1, h2), jnp.float32),
        "w3": scale * jax.random.normal(k5, (h2, 1), jnp.float32),
        "b3": scale * jax.random.normal(k6, (1, 1), jnp.float32),
    }


def _reference_forward(img, params, *, bf16_matmuls=False):
    """Pure-JAX reference mirroring the PyTorch module.  With bf16_matmuls=True
    all matmuls use the same bf16-input / f32-accumulate scheme as the kernel
    (for a tight numerical comparison)."""
    x = img.reshape(img.shape[0], -1)
    cast = (lambda a: a.astype(jnp.bfloat16)) if bf16_matmuls else (lambda a: a)
    h = jnp.dot(cast(x), cast(params["w1"]),
                preferred_element_type=jnp.float32) + params["b1"]
    h = jnp.where(h > 0, h, 0.2 * h)
    h = jnp.dot(cast(h), cast(params["w2"]),
                preferred_element_type=jnp.float32) + params["b2"]
    h = jnp.where(h > 0, h, 0.2 * h)
    h = jnp.dot(cast(h), cast(params["w3"]),
                preferred_element_type=jnp.float32) + params["b3"]
    return jax.nn.sigmoid(h)


if __name__ == "__main__":
    # Small shapes consistent with the module: img_shape=(C,H,W)=(4,16,16),
    # latent_dim=128 -> Linear(1024, 256) -> Linear(256, 128) -> Linear(128, 1)
    batch = 2
    img_shape = (4, 16, 16)
    latent_dim = 128

    key = jax.random.PRNGKey(0)
    k_img, k_par = jax.random.split(key)
    img = jax.random.normal(k_img, (batch, *img_shape), jnp.float32)
    params = init_params(k_par, math.prod(img_shape), latent_dim)

    validity = jax.block_until_ready(discriminator_forward(img, params))

    ref_bf16 = _reference_forward(img, params, bf16_matmuls=True)
    ref_f32 = _reference_forward(img, params, bf16_matmuls=False)

    assert validity.shape == (batch, 1)
    # Tight check against a reference that mirrors the kernel's bf16 matmuls.
    assert jnp.allclose(validity, ref_bf16, atol=1e-3, rtol=1e-3)
    # Looser check against the pure-f32 PyTorch-equivalent reference.
    assert jnp.allclose(validity, ref_f32, atol=3e-2, rtol=3e-2)

    print("KERNEL_OK")
</pallas_src>

<mosaic_0001>
module attributes {stable_mosaic.version = 11 : i64} {
  func.func @_discriminator_kernel(%arg0: i32, %arg1: memref<16x1024xf32, #tpu.memory_space<vmem>>, %arg2: memref<1024x256xbf16, #tpu.memory_space<vmem>>, %arg3: memref<1x256xf32, #tpu.memory_space<vmem>>, %arg4: memref<256x128xbf16, #tpu.memory_space<vmem>>, %arg5: memref<1x128xf32, #tpu.memory_space<vmem>>, %arg6: memref<8x128xbf16, #tpu.memory_space<vmem>>, %arg7: memref<1x1xf32, #tpu.memory_space<vmem>>, %arg8: memref<1x16xf32, #tpu.memory_space<vmem>>) attributes {dimension_semantics = [#tpu.dimension_semantics<parallel>], iteration_bounds = array<i64: 1>, scalar_prefetch = 0 : i64, scratch_operands = 0 : i64, tpu.core_type = #tpu.core_type<tc>, window_params = [{transform_indices = @transform_0, window_bounds = array<i64: 16, 1024>}, {pipeline_mode = #tpu.pipeline_mode<synchronous>, transform_indices = @transform_1, window_bounds = array<i64: 1024, 256>}, {pipeline_mode = #tpu.pipeline_mode<synchronous>, transform_indices = @transform_2, window_bounds = array<i64: 1, 256>}, {pipeline_mode = #tpu.pipeline_mode<synchronous>, transform_indices = @transform_3, window_bounds = array<i64: 256, 128>}, {pipeline_mode = #tpu.pipeline_mode<synchronous>, transform_indices = @transform_4, window_bounds = array<i64: 1, 128>}, {pipeline_mode = #tpu.pipeline_mode<synchronous>, transform_indices = @transform_5, window_bounds = array<i64: 8, 128>}, {pipeline_mode = #tpu.pipeline_mode<synchronous>, transform_indices = @transform_6, window_bounds = array<i64: 1, 1>}, {transform_indices = @transform_7, window_bounds = array<i64: 1, 16>}]} {
    %c0 = arith.constant 0 : index
    %c0_0 = arith.constant 0 : index
    %0 = vector.load %arg1[%c0, %c0_0] : memref<16x1024xf32, #tpu.memory_space<vmem>>, vector<16x1024xf32>
    %1 = arith.truncf %0 : vector<16x1024xf32> to vector<16x1024xbf16>
    %c0_1 = arith.constant 0 : index
    %c0_2 = arith.constant 0 : index
    %2 = vector.load %arg2[%c0_1, %c0_2] : memref<1024x256xbf16, #tpu.memory_space<vmem>>, vector<1024x256xbf16>
    %cst = arith.constant dense<0.000000e+00> : vector<16x256xf32>
    %3 = tpu.matmul %1, %2, %cst {dimension_numbers = #tpu.dot_dimension_numbers<[1], [0], [0], [1], [0, 0, 1, 1], [], []>} : vector<16x1024xbf16>, vector<1024x256xbf16>, vector<16x256xf32> -> vector<16x256xf32>
    %c0_3 = arith.constant 0 : index
    %c0_4 = arith.constant 0 : index
    %4 = vector.load %arg3[%c0_3, %c0_4] : memref<1x256xf32, #tpu.memory_space<vmem>>, vector<1x256xf32>
    %5 = vector.broadcast %4 : vector<1x256xf32> to vector<16x256xf32>
    %6 = arith.addf %3, %5 : vector<16x256xf32>
    %cst_5 = arith.constant 0.000000e+00 : f32
    %7 = vector.broadcast %cst_5 : f32 to vector<16x256xf32>
    %8 = arith.cmpf ogt, %6, %7 : vector<16x256xf32>
    %cst_6 = arith.constant 2.000000e-01 : f32
    %9 = vector.broadcast %cst_6 : f32 to vector<16x256xf32>
    %10 = arith.mulf %9, %6 : vector<16x256xf32>
    %11 = arith.select %8, %6, %10 : vector<16x256xi1>, vector<16x256xf32>
    %12 = arith.truncf %11 : vector<16x256xf32> to vector<16x256xbf16>
    %c0_7 = arith.constant 0 : index
    %c0_8 = arith.constant 0 : index
    %13 = vector.load %arg4[%c0_7, %c0_8] : memref<256x128xbf16, #tpu.memory_space<vmem>>, vector<256x128xbf16>
    %cst_9 = arith.constant dense<0.000000e+00> : vector<16x128xf32>
    %14 = tpu.matmul %12, %13, %cst_9 {dimension_numbers = #tpu.dot_dimension_numbers<[1], [0], [0], [1], [0, 0, 1, 1], [], []>} : vector<16x256xbf16>, vector<256x128xbf16>, vector<16x128xf32> -> vector<16x128xf32>
    %c0_10 = arith.constant 0 : index
    %c0_11 = arith.constant 0 : index
    %15 = vector.load %arg5[%c0_10, %c0_11] : memref<1x128xf32, #tpu.memory_space<vmem>>, vector<1x128xf32>
    %16 = vector.broadcast %15 : vector<1x128xf32> to vector<16x128xf32>
    %17 = arith.addf %14, %16 : vector<16x128xf32>
    %cst_12 = arith.constant 0.000000e+00 : f32
    %18 = vector.broadcast %cst_12 : f32 to vector<16x128xf32>
    %19 = arith.cmpf ogt, %17, %18 : vector<16x128xf32>
    %cst_13 = arith.constant 2.000000e-01 : f32
    %20 = vector.broadcast %cst_13 : f32 to vector<16x128xf32>
    %21 = arith.mulf %20, %17 : vector<16x128xf32>
    %22 = arith.select %19, %17, %21 : vector<16x128xi1>, vector<16x128xf32>
    %c0_14 = arith.constant 0 : index
    %c0_15 = arith.constant 0 : index
    %23 = vector.load %arg6[%c0_14, %c0_15] : memref<8x128xbf16, #tpu.memory_space<vmem>>, vector<8x128xbf16>
    %24 = arith.truncf %22 : vector<16x128xf32> to vector<16x128xbf16>
    %cst_16 = arith.constant dense<0.000000e+00> : vector<8x16xf32>
    %25 = tpu.matmul %23, %24, %cst_16 {dimension_numbers = #tpu.dot_dimension_numbers<[1], [1], [0], [0], [0, 0, 1, 0], [], []>} : vector<8x128xbf16>, vector<16x128xbf16>, vector<8x16xf32> -> vector<8x16xf32>
    %26 = vector.extract_strided_slice %25 {offsets = [0, 0], sizes = [1, 16], strides = [1, 1]} : vector<8x16xf32> to vector<1x16xf32>
    %c0_17 = arith.constant 0 : index
    %c0_18 = arith.constant 0 : index
    %27 = vector.load %arg7[%c0_17, %c0_18] : memref<1x1xf32, #tpu.memory_space<vmem>>, vector<1x1xf32>
    %28 = vector.broadcast %27 : vector<1x1xf32> to vector<1x16xf32>
    %29 = arith.addf %26, %28 : vector<1x16xf32>
    %30 = arith.negf %29 : vector<1x16xf32>
    %31 = math.exp %30 : vector<1x16xf32>
    %cst_19 = arith.constant 1.000000e+00 : f32
    %32 = vector.broadcast %cst_19 : f32 to vector<1x16xf32>
    %33 = arith.addf %32, %31 : vector<1x16xf32>
    %34 = arith.divf %32, %33 : vector<1x16xf32>
    %c0_20 = arith.constant 0 : index
    %c0_21 = arith.constant 0 : index
    %35 = vector.load %arg8[%c0_20, %c0_21] : memref<1x16xf32, #tpu.memory_space<vmem>>, vector<1x16xf32>
    tpu.vector_store %arg8[%c0_20, %c0_21], %34 {strides = array<i32>} : memref<1x16xf32, #tpu.memory_space<vmem>>, vector<1x16xf32>,
    return
  }
  func.func @transform_0(%arg0: i32) -> (i32, i32) {
    %c0_i32 = arith.constant 0 : i32
    %c0_i32_0 = arith.constant 0 : i32
    return %arg0, %c0_i32 : i32, i32
  }
  func.func @transform_1(%arg0: i32) -> (i32, i32) {
    %c0_i32 = arith.constant 0 : i32
    %c0_i32_0 = arith.constant 0 : i32
    %c0_i32_1 = arith.constant 0 : i32
    return %c0_i32, %c0_i32_0 : i32, i32
  }
  func.func @transform_2(%arg0: i32) -> (i32, i32) {
    %c0_i32 = arith.constant 0 : i32
    %c0_i32_0 = arith.constant 0 : i32
    %c0_i32_1 = arith.constant 0 : i32
    return %c0_i32, %c0_i32_0 : i32, i32
  }
  func.func @transform_3(%arg0: i32) -> (i32, i32) {
    %c0_i32 = arith.constant 0 : i32
    %c0_i32_0 = arith.constant 0 : i32
    %c0_i32_1 = arith.constant 0 : i32
    return %c0_i32, %c0_i32_0 : i32, i32
  }
  func.func @transform_4(%arg0: i32) -> (i32, i32) {
    %c0_i32 = arith.constant 0 : i32
    %c0_i32_0 = arith.constant 0 : i32
    %c0_i32_1 = arith.constant 0 : i32
    return %c0_i32, %c0_i32_0 : i32, i32
  }
  func.func @transform_5(%arg0: i32) -> (i32, i32) {
    %c0_i32 = arith.constant 0 : i32
    %c0_i32_0 = arith.constant 0 : i32
    %c0_i32_1 = arith.constant 0 : i32
    return %c0_i32, %c0_i32_0 : i32, i32
  }
  func.func @transform_6(%arg0: i32) -> (i32, i32) {
    %c0_i32 = arith.constant 0 : i32
    %c0_i32_0 = arith.constant 0 : i32
    %c0_i32_1 = arith.constant 0 : i32
    return %c0_i32, %c0_i32_0 : i32, i32
  }
  func.func @transform_7(%arg0: i32) -> (i32, i32) {
    %c0_i32 = arith.constant 0 : i32
    %c0_i32_0 = arith.constant 0 : i32
    return %c0_i32, %arg0 : i32, i32
  }
}

</mosaic_0001>

<bundles_post_ra>
// kernel: tpu_custom_call.1
= control target key start
LH: loop header
LB: loop body
LE: loop exit
PB: predicated region body
PF: predicated region fallthrough
CT: control target
= control target key end

     0   :  { %s2415_s0 = inlined_call_operand.hbm [shape: f32[2,1024], index: 0, kind: input, shape index: {}]   ;;  %s2416_s1 = inlined_call_operand.hbm [shape: bf16[1024,256], index: 1, kind: input, shape index: {}]   ;;  %s2417_s2 = inlined_call_operand.vmem [shape: f32[1,256], index: 2, kind: input, shape index: {}]   ;;  %s2418_s3 = inlined_call_operand.hbm [shape: bf16[256,128], index: 3, kind: input, shape index: {}]   ;;  %s2419_s4 = inlined_call_operand.hbm [shape: f32[1,128], index: 4, kind: input, shape index: {}]   ;;  %s2420_s5 = inlined_call_operand.vmem [shape: bf16[8,128], index: 5, kind: input, shape index: {}]   ;;  %s2421_s6 = inlined_call_operand.<no memory space> [shape: f32[1,1], index: 6, kind: input, shape index: {}]   ;;  %s2422_s7 = inlined_call_operand.hbm [shape: f32[1,16], index: 7, kind: output, shape index: {}]  }
   0x1   :  { %v12_v0 = vstv %s2421_s6 }
   0x2   :  { %13 = vst [vmem:[#allocation2] sm:$0x1] %v12_v0 }
   0x3   :  { %14 = vsyncpa [#allocation4], 0 }
   0x4   :  { %15 = vsyncpa [#allocation7], 0 }
   0x5   :  { %16 = vsyncpa [#allocation10], 0 }
   0x6   :  { %17 = vsyncpa [#allocation5], 0  ;;  %s35_s28 = sshll.u32 %s2416_s1, 4  ;;  %s36_s28 = int_to_ptr.hbm [resolvable:$true] %s35_s28 }
   0x7   :  { %21 = vsyncadd [#allocation4], 1792  ;;  %s2294_s29 = smov [#allocation6]   ;;  %s22_s10 = sshll.u32 %s2415_s0, 4  ;;  %s23_s10 = int_to_ptr.hbm [resolvable:$true] %s22_s10 }
   0x8   :  { %s37_s30 = sshll.u32 %s2294_s29, 4  ;;  %s2295_s11 = smov 128   ;;  %s38_s30 = int_to_ptr.vmem [resolvable:$true] %s37_s30 }
   0x9   :  { %s2296_s6 = smov 8   ;;  %s2297_s12 = smov [#allocation3]  }
   0xa   :  { %43 = dma.hbm_to_vmem [thread:$0]  %s36_s28, 16384, %s38_s30, [#allocation7], %s2295_s11, %s2295_s11, %s2296_s6  }
   0xb   :  { %s24_s13 = sshll.u32 %s2297_s12, 4  ;;  %s2298_s14 = smov 256   ;;  %s25_s13 = int_to_ptr.vmem [resolvable:$true] %s24_s13 }
   0xc   :  { %s2299_s15 = smov 16   ;;  %s50_s17 = sshll.u32 %s2418_s3, 4  ;;  %s51_s17 = int_to_ptr.hbm [resolvable:$true] %s50_s17 }
   0xd   :  { %30 = dma.hbm_to_vmem [thread:$0]  %s23_s10, 256, %s25_s13, [#allocation4], %s2298_s14, %s2298_s14, %s2299_s15  }
   0xe   :  { %s2300_s18 = smov [#allocation8]   ;;  %s64_s21 = sshll.u32 %s2419_s4, 4  ;;  %s65_s21 = int_to_ptr.hbm [resolvable:$true] %s64_s21 }
   0xf   :  { %s52_s19 = sshll.u32 %s2300_s18, 4  ;;  %s2301_s22 = smov 64   ;;  %s53_s19 = int_to_ptr.vmem [resolvable:$true] %s52_s19 }
  0x10   :  { %s2302_s23 = smov 4   ;;  %s2303_s24 = smov [#allocation9]  }
  0x11   :  { %58 = dma.hbm_to_vmem [thread:$0]  %s51_s17, 2048, %s53_s19, [#allocation7], %s2301_s22, %s2301_s22, %s2302_s23  }
  0x12   :  { %s66_s25 = sshll.u32 %s2303_s24, 4  ;;  %s67_s25 = int_to_ptr.vmem [resolvable:$true] %s66_s25 }
  0x13   :  { %69 = dma.hbm_to_vmem [thread:$0]  %s65_s21, 16, %s67_s25, [#allocation10]  }
  0x14   :  { %2286 = dma.done.wait [#allocation4], 2048  }
  0x15   :  { %2287 = vsyncadd [#allocation4], 4294965248 }
  0x16   :  { %2288 = dma.done.wait [#allocation7], 18432  }
  0x17   :  { %2289 = vsyncadd [#allocation7], 4294948864 }
  0x18   :  { %2290 = dma.done.wait [#allocation10], 16  }
  0x19   :  { %2291 = vsyncadd [#allocation10], 4294967280  ;;  %v1485_v1 = vld [vmem:[#allocation6 + $0x70] sm:$0xf]  ;;  %v2019_v2 = vld [vmem:[#allocation6 + $0x74] sm:$0xf0] }
  0x1a   :  { %v1549_v3 = vld [vmem:[#allocation6 + $0xf0] sm:$0xf]  ;;  %v1486_v4 = vor.u32 %v2019_v2, %v1485_v1  ;;  %v2035_v5 = vld [vmem:[#allocation6 + $0xf4] sm:$0xf0]  ;;  %v1477_v12 = vld [vmem:[#allocation6 + $0x60] sm:$0xf] }
  0x1b   :  { %v1613_v6 = vld [vmem:[#allocation6 + $0x170] sm:$0xf]  ;;  %v2051_v7 = vld [vmem:[#allocation6 + $0x174] sm:$0xf0]  ;;  %v1550_v8 = vor.u32 %v2035_v5, %v1549_v3  ;;  %v2017_v14 = vld [vmem:[#allocation6 + $0x64] sm:$0xf0] }
  0x1c   :  { %v1614_v9 = vor.u32 %v2051_v7, %v1613_v6  ;;  %v1677_v10 = vld [vmem:[#allocation6 + $0x1f0] sm:$0xf]  ;;  %v2067_v11 = vld [vmem:[#allocation6 + $0x1f4] sm:$0xf0]  ;;  %960 = vmatpush.bf16.msra.mxu0 %v1486_v4  ;;  %v1541_v15 = vld [vmem:[#allocation6 + $0xe0] sm:$0xf]  ;;  %v1478_v17 = vor.u32 %v2017_v14, %v1477_v12 }
  0x1d   :  { %v1678_v13 = vor.u32 %v2067_v11, %v1677_v10  ;;  %v2033_v16 = vld [vmem:[#allocation6 + $0xe4] sm:$0xf0]  ;;  %974 = vmatpush.bf16.msra.mxu1 %v1550_v8  ;;  %v1605_v19 = vld [vmem:[#allocation6 + $0x160] sm:$0xf]  ;;  %v1469_v24 = vld [vmem:[#allocation6 + $0x50] sm:$0xf] }
  0x1e   :  { %988 = vmatpush.bf16.msra.mxu2 %v1614_v9  ;;  %v1542_v18 = vor.u32 %v2033_v16, %v1541_v15  ;;  %v2049_v20 = vld [vmem:[#allocation6 + $0x164] sm:$0xf0]  ;;  %v1669_v21 = vld [vmem:[#allocation6 + $0x1e0] sm:$0xf]  ;;  %v2015_v25 = vld [vmem:[#allocation6 + $0x54] sm:$0xf0] }
  0x1f   :  { %1002 = vmatpush.bf16.msra.mxu3 %v1678_v13  ;;  %v1606_v22 = vor.u32 %v2049_v20, %v1605_v19  ;;  %v2065_v23 = vld [vmem:[#allocation6 + $0x1e4] sm:$0xf0]  ;;  %v1533_v27 = vld [vmem:[#allocation6 + $0xd0] sm:$0xf]  ;;  %v2031_v28 = vld [vmem:[#allocation6 + $0xd4] sm:$0xf0]  ;;  %v1470_v30 = vor.u32 %v2015_v25, %v1469_v24 }
  0x20   :  { %v1670_v26 = vor.u32 %v2065_v23, %v1669_v21  ;;  %v1597_v29 = vld [vmem:[#allocation6 + $0x150] sm:$0xf]  ;;  %961 = vmatpush.bf16.msra.mxu0 %v1478_v17  ;;  %v2047_v31 = vld [vmem:[#allocation6 + $0x154] sm:$0xf0]  ;;  %v1534_v34 = vor.u32 %v2031_v28, %v1533_v27  ;;  %v1461_v36 = vld [vmem:[#allocation6 + $0x40] sm:$0xf] }
  0x21   :  { %v1661_v32 = vld [vmem:[#allocation6 + $0x1d0] sm:$0xf]  ;;  %v2063_v33 = vld [vmem:[#allocation6 + $0x1d4] sm:$0xf0]  ;;  %975 = vmatpush.bf16.msra.mxu1 %v1542_v18  ;;  %v1598_v35 = vor.u32 %v2047_v31, %v1597_v29  ;;  %v2013_v37 = vld [vmem:[#allocation6 + $0x44] sm:$0xf0] }
  0x22   :  { %989 = vmatpush.bf16.msra.mxu2 %v1606_v22  ;;  %v1525_v38 = vld [vmem:[#allocation6 + $0xc0] sm:$0xf]  ;;  %v1662_v39 = vor.u32 %v2063_v33, %v1661_v32  ;;  %v2029_v40 = vld [vmem:[#allocation6 + $0xc4] sm:$0xf0]  ;;  %v1462_v45 = vor.u32 %v2013_v37, %v1461_v36  ;;  %v1453_v48 = vld [vmem:[#allocation6 + $0x30] sm:$0xf] }
  0x23   :  { %1003 = vmatpush.bf16.msra.mxu3 %v1670_v26  ;;  %v1589_v41 = vld [vmem:[#allocation6 + $0x140] sm:$0xf]  ;;  %v2045_v42 = vld [vmem:[#allocation6 + $0x144] sm:$0xf0]  ;;  %v1526_v46 = vor.u32 %v2029_v40, %v1525_v38  ;;  %v2011_v49 = vld [vmem:[#allocation6 + $0x34] sm:$0xf0] }
  0x24   :  { %v1653_v43 = vld [vmem:[#allocation6 + $0x1c0] sm:$0xf]  ;;  %v2061_v44 = vld [vmem:[#allocation6 + $0x1c4] sm:$0xf0]  ;;  %962 = vmatpush.bf16.msra.mxu0 %v1470_v30  ;;  %v1590_v47 = vor.u32 %v2045_v42, %v1589_v41  ;;  %v1517_v50 = vld [vmem:[#allocation6 + $0xb0] sm:$0xf]  ;;  %v1454_v57 = vor.u32 %v2011_v49, %v1453_v48 }
  0x25   :  { %976 = vmatpush.bf16.msra.mxu1 %v1534_v34  ;;  %v1654_v51 = vor.u32 %v2061_v44, %v1653_v43  ;;  %v2027_v52 = vld [vmem:[#allocation6 + $0xb4] sm:$0xf0]  ;;  %v1581_v53 = vld [vmem:[#allocation6 + $0x130] sm:$0xf]  ;;  %v1445_v60 = vld [vmem:[#allocation6 + $0x20] sm:$0xf] }
  0x26   :  { %990 = vmatpush.bf16.msra.mxu2 %v1598_v35  ;;  %v2043_v54 = vld [vmem:[#allocation6 + $0x134] sm:$0xf0]  ;;  %v1645_v55 = vld [vmem:[#allocation6 + $0x1b0] sm:$0xf]  ;;  %v1518_v58 = vor.u32 %v2027_v52, %v1517_v50  ;;  %v2009_v61 = vld [vmem:[#allocation6 + $0x24] sm:$0xf0] }
  0x27   :  { %1004 = vmatpush.bf16.msra.mxu3 %v1662_v39  ;;  %v2059_v56 = vld [vmem:[#allocation6 + $0x1b4] sm:$0xf0]  ;;  %v1582_v59 = vor.u32 %v2043_v54, %v1581_v53  ;;  %v1509_v62 = vld [vmem:[#allocation6 + $0xa0] sm:$0xf]  ;;  %v2025_v0 = vld [vmem:[#allocation6 + $0xa4] sm:$0xf0]  ;;  %v1446_v5 = vor.u32 %v2009_v61, %v1445_v60 }
  0x28   :  { %963 = vmatpush.bf16.msra.mxu0 %v1462_v45  ;;  %v1646_v63 = vor.u32 %v2059_v56, %v1645_v55  ;;  %v1573_v1 = vld [vmem:[#allocation6 + $0x120] sm:$0xf]  ;;  %v2041_v2 = vld [vmem:[#allocation6 + $0x124] sm:$0xf0]  ;;  %v1510_v6 = vor.u32 %v2025_v0, %v1509_v62  ;;  %v1437_v8 = vld [vmem:[#allocation6 + $0x10] sm:$0xf] }
  0x29   :  { %977 = vmatpush.bf16.msra.mxu1 %v1526_v46  ;;  %v1637_v3 = vld [vmem:[#allocation6 + $0x1a0] sm:$0xf]  ;;  %v2057_v4 = vld [vmem:[#allocation6 + $0x1a4] sm:$0xf0]  ;;  %v1574_v7 = vor.u32 %v2041_v2, %v1573_v1  ;;  %v2007_v9 = vld [vmem:[#allocation6 + $0x14] sm:$0xf0] }
  0x2a   :  { %991 = vmatpush.bf16.msra.mxu2 %v1590_v47  ;;  %v1501_v10 = vld [vmem:[#allocation6 + $0x90] sm:$0xf]  ;;  %v1638_v11 = vor.u32 %v2057_v4, %v1637_v3  ;;  %v2023_v12 = vld [vmem:[#allocation6 + $0x94] sm:$0xf0]  ;;  %v1438_v17 = vor.u32 %v2007_v9, %v1437_v8  ;;  %v1429_v18 = vld [vmem:[#allocation6] sm:$0xf] }
  0x2b   :  { %1005 = vmatpush.bf16.msra.mxu3 %v1654_v51  ;;  %v1565_v13 = vld [vmem:[#allocation6 + $0x110] sm:$0xf]  ;;  %v2039_v14 = vld [vmem:[#allocation6 + $0x114] sm:$0xf0]  ;;  %v2005_v19 = vld [vmem:[#allocation6 + $0x4] sm:$0xf0]  ;;  %v1502_v20 = vor.u32 %v2023_v12, %v1501_v10 }
  0x2c   :  { %964 = vmatpush.bf16.msra.mxu0 %v1454_v57  ;;  %v1629_v15 = vld [vmem:[#allocation6 + $0x190] sm:$0xf]  ;;  %v2055_v16 = vld [vmem:[#allocation6 + $0x194] sm:$0xf0]  ;;  %v1566_v21 = vor.u32 %v2039_v14, %v1565_v13  ;;  %v1493_v22 = vld [vmem:[#allocation6 + $0x80] sm:$0xf]  ;;  %v1430_v32 = vor.u32 %v2005_v19, %v1429_v18 }
  0x2d   :  { %978 = vmatpush.bf16.msra.mxu1 %v1518_v58  ;;  %v2021_v23 = vld [vmem:[#allocation6 + $0x84] sm:$0xf0]  ;;  %v1557_v24 = vld [vmem:[#allocation6 + $0x100] sm:$0xf]  ;;  %v1630_v25 = vor.u32 %v2055_v16, %v1629_v15  ;;  %v1741_v29 = vld [vmem:[#allocation6 + $0x270] sm:$0xf] }
  0x2e   :  { %992 = vmatpush.bf16.msra.mxu2 %v1582_v59  ;;  %v2037_v26 = vld [vmem:[#allocation6 + $0x104] sm:$0xf0]  ;;  %v1621_v27 = vld [vmem:[#allocation6 + $0x180] sm:$0xf]  ;;  %v2083_v30 = vld [vmem:[#allocation6 + $0x274] sm:$0xf0]  ;;  %v1494_v36 = vor.u32 %v2021_v23, %v1493_v22 }
  0x2f   :  { %1006 = vmatpush.bf16.msra.mxu3 %v1646_v63  ;;  %v2053_v28 = vld [vmem:[#allocation6 + $0x184] sm:$0xf0]  ;;  %v1805_v31 = vld [vmem:[#allocation6 + $0x2f0] sm:$0xf]  ;;  %v2099_v33 = vld [vmem:[#allocation6 + $0x2f4] sm:$0xf0]  ;;  %v1558_v37 = vor.u32 %v2037_v26, %v1557_v24  ;;  %v1742_v41 = vor.u32 %v2083_v30, %v1741_v29 }
  0x30   :  { %965 = vmatpush.bf16.msra.mxu0 %v1446_v5  ;;  %v1869_v34 = vld [vmem:[#allocation6 + $0x370] sm:$0xf]  ;;  %v2115_v35 = vld [vmem:[#allocation6 + $0x374] sm:$0xf0]  ;;  %v1622_v40 = vor.u32 %v2053_v28, %v1621_v27  ;;  %v1733_v42 = vld [vmem:[#allocation6 + $0x260] sm:$0xf]  ;;  %v1806_v44 = vor.u32 %v2099_v33, %v1805_v31 }
  0x31   :  { %979 = vmatpush.bf16.msra.mxu1 %v1510_v6  ;;  %v1933_v38 = vld [vmem:[#allocation6 + $0x3f0] sm:$0xf]  ;;  %v2131_v39 = vld [vmem:[#allocation6 + $0x3f4] sm:$0xf0]  ;;  %v2081_v43 = vld [vmem:[#allocation6 + $0x264] sm:$0xf0]  ;;  %v1870_v45 = vor.u32 %v2115_v35, %v1869_v34 }
  0x32   :  { %993 = vmatpush.bf16.msra.mxu2 %v1574_v7  ;;  %v1797_v46 = vld [vmem:[#allocation6 + $0x2e0] sm:$0xf]  ;;  %v2097_v47 = vld [vmem:[#allocation6 + $0x2e4] sm:$0xf0]  ;;  %v1934_v49 = vor.u32 %v2131_v39, %v1933_v38  ;;  %v1725_v53 = vld [vmem:[#allocation6 + $0x250] sm:$0xf]  ;;  %v1734_v57 = vor.u32 %v2081_v43, %v1733_v42 }
  0x33   :  { %1007 = vmatpush.bf16.msra.mxu3 %v1638_v11  ;;  %v1861_v48 = vld [vmem:[#allocation6 + $0x360] sm:$0xf]  ;;  %v2113_v50 = vld [vmem:[#allocation6 + $0x364] sm:$0xf0]  ;;  %v93_v55 = vld [vmem:[#allocation3 + $0x10] sm:$0xff]  ;;  %v1798_v60 = vor.u32 %v2097_v47, %v1797_v46  ;;  %s2305_s27 = smov [#allocation11]  }
  0x34   :  { %966 = vmatpush.bf16.msra.mxu0 %v1438_v17  ;;  %v1925_v51 = vld [vmem:[#allocation6 + $0x3e0] sm:$0xf]  ;;  %v2129_v52 = vld [vmem:[#allocation6 + $0x3e4] sm:$0xf0]  ;;  %v2079_v58 = vld [vmem:[#allocation6 + $0x254] sm:$0xf0]  ;;  %v1862_v61 = vor.u32 %v2113_v50, %v1861_v48 }
  0x35   :  { %980 = vmatpush.bf16.msra.mxu1 %v1502_v20  ;;  %v91_v54 = vld [vmem:[#allocation3] sm:$0xff]  ;;  %v97_v59 = vld [vmem:[#allocation3 + $0x30] sm:$0xff]  ;;  %v2095_v63 = vld [vmem:[#allocation6 + $0x2d4] sm:$0xf0]  ;;  %125 = vst [vmem:[#allocation1 + $0x1] ss:$4 sm:$0xff] %v93_v55  ;;  %v1926_v0 = vor.u32 %v2129_v52, %v1925_v51  ;;  %v1726_v5 = vor.u32 %v2079_v58, %v1725_v53 }
  0x36   :  { %994 = vmatpush.bf16.msra.mxu2 %v1566_v21  ;;  %v95_v56 = vld [vmem:[#allocation3 + $0x20] sm:$0xff]  ;;  %123 = vst [vmem:[#allocation1] ss:$4 sm:$0xff] %v91_v54  ;;  %v1789_v62 = vld [vmem:[#allocation6 + $0x2d0] sm:$0xf]  ;;  %s1415_s30 = sshll.u32 %s2422_s7, 4  ;;  %s1416_s30 = int_to_ptr.hbm [resolvable:$true] %s1415_s30 }
  0x37   :  { %1008 = vmatpush.bf16.msra.mxu3 %v1630_v25  ;;  %v1853_v1 = vld [vmem:[#allocation6 + $0x350] sm:$0xf]  ;;  %v2111_v2 = vld [vmem:[#allocation6 + $0x354] sm:$0xf0]  ;;  %127 = vst [vmem:[#allocation1 + $0x2] ss:$4 sm:$0xff] %v95_v56  ;;  %v1790_v8 = vor.u32 %v2095_v63, %v1789_v62 }
  0x38   :  { %967 = vmatpush.bf16.msra.mxu0 %v1430_v32  ;;  %v1917_v3 = vld [vmem:[#allocation6 + $0x3d0] sm:$0xf]  ;;  %v2127_v4 = vld [vmem:[#allocation6 + $0x3d4] sm:$0xf0]  ;;  %129 = vst [vmem:[#allocation1 + $0x3] ss:$4 sm:$0xff] %v97_v59  ;;  %v1854_v9 = vor.u32 %v2111_v2, %v1853_v1 }
  0x39   :  { %981 = vmatpush.bf16.msra.mxu1 %v1494_v36  ;;  %v1717_v6 = vld [vmem:[#allocation6 + $0x240] sm:$0xf]  ;;  %v2077_v7 = vld [vmem:[#allocation6 + $0x244] sm:$0xf0]  ;;  %v1918_v13 = vor.u32 %v2127_v4, %v1917_v3  ;;  %v1709_v18 = vld [vmem:[#allocation6 + $0x230] sm:$0xf] }
  0x3a   :  { %995 = vmatpush.bf16.msra.mxu2 %v1558_v37  ;;  %v1781_v10 = vld [vmem:[#allocation6 + $0x2c0] sm:$0xf]  ;;  %v2093_v11 = vld [vmem:[#allocation6 + $0x2c4] sm:$0xf0]  ;;  %v2075_v19 = vld [vmem:[#allocation6 + $0x234] sm:$0xf0]  ;;  %v1718_v20 = vor.u32 %v2077_v7, %v1717_v6 }
  0x3b   :  { %1009 = vmatpush.bf16.msra.mxu3 %v1622_v40  ;;  %v1845_v12 = vld [vmem:[#allocation6 + $0x340] sm:$0xf]  ;;  %v2109_v14 = vld [vmem:[#allocation6 + $0x344] sm:$0xf0]  ;;  %v101_v21 = vld [vmem:[#allocation3 + $0x50] sm:$0xff]  ;;  %v1782_v25 = vor.u32 %v2093_v11, %v1781_v10  ;;  %v1710_v37 = vor.u32 %v2075_v19, %v1709_v18  ;;  %vm1406_vm9 = vcmask 122880  }
  0x3c   :  { %1016 = vmatpush.bf16.msrb.mxu0 %v1742_v41  ;;  %v1909_v15 = vld [vmem:[#allocation6 + $0x3c0] sm:$0xf]  ;;  %v2125_v16 = vld [vmem:[#allocation6 + $0x3c4] sm:$0xf0]  ;;  %v1773_v22 = vld [vmem:[#allocation6 + $0x2b0] sm:$0xf]  ;;  %v1846_v26 = vor.u32 %v2109_v14, %v1845_v12 }
  0x3d   :  { %1030 = vmatpush.bf16.msrb.mxu1 %v1806_v44  ;;  %v99_v17 = vld [vmem:[#allocation3 + $0x40] sm:$0xff]  ;;  %v2091_v23 = vld [vmem:[#allocation6 + $0x2b4] sm:$0xf0]  ;;  %v1837_v24 = vld [vmem:[#allocation6 + $0x330] sm:$0xf]  ;;  %v1910_v31 = vor.u32 %v2125_v16, %v1909_v15 }
  0x3e   :  { %1044 = vmatpush.bf16.msrb.mxu2 %v1870_v45  ;;  %v103_v27 = vld [vmem:[#allocation3 + $0x60] sm:$0xff]  ;;  %v2107_v28 = vld [vmem:[#allocation6 + $0x334] sm:$0xf0]  ;;  %v1901_v29 = vld [vmem:[#allocation6 + $0x3b0] sm:$0xf]  ;;  %v1774_v40 = vor.u32 %v2091_v23, %v1773_v22 }
  0x3f   :  { %1058 = vmatpush.bf16.msrb.mxu3 %v1934_v49  ;;  %v2123_v30 = vld [vmem:[#allocation6 + $0x3b4] sm:$0xf0]  ;;  %v105_v32 = vld [vmem:[#allocation3 + $0x70] sm:$0xff]  ;;  %v2361_v34 = vld.sshfl [vmem:[#allocation1 + $0x8] sm:$0xff pattern:$0x73625140]  ;;  %v1838_v41 = vor.u32 %v2107_v28, %v1837_v24 }
  0x40   :  { %1017 = vmatpush.bf16.msrb.mxu0 %v1734_v57  ;;  %v138_v33 = vld.sshfl [vmem:[#allocation1] sm:$0xff pattern:$0x73625140]  ;;  %v140_v35 = vld.sshfl [vmem:[#allocation1 + $0x10] sm:$0xff pattern:$0x73625140]  ;;  %v1902_v44 = vor.u32 %v2123_v30, %v1901_v29 }
  0x41   :  { %1031 = vmatpush.bf16.msrb.mxu1 %v1798_v60  ;;  %v2363_v36 = vld.sshfl [vmem:[#allocation1 + $0x18] sm:$0xff pattern:$0x73625140]  ;;  %v1701_v38 = vld [vmem:[#allocation6 + $0x220] sm:$0xf]  ;;  %v94_v63 = vld [vmem:[#allocation3 + $0x18] sm:$0xff] }
  0x42   :  { %1045 = vmatpush.bf16.msrb.mxu2 %v1862_v61  ;;  %146 = vst [vmem:[#allocation1] ss:$4 sm:$0xff] %v99_v17  ;;  %v2073_v39 = vld [vmem:[#allocation6 + $0x224] sm:$0xf0]  ;;  %v1765_v42 = vld [vmem:[#allocation6 + $0x2a0] sm:$0xf] }
  0x43   :  { %1059 = vmatpush.bf16.msrb.mxu3 %v1926_v0  ;;  %147 = vst [vmem:[#allocation1 + $0x1] ss:$4 sm:$0xff] %v101_v21  ;;  %v2089_v43 = vld [vmem:[#allocation6 + $0x2a4] sm:$0xf0]  ;;  %v1829_v45 = vld [vmem:[#allocation6 + $0x320] sm:$0xf]  ;;  %v1702_v49 = vor.u32 %v2073_v39, %v1701_v38 }
  0x44   :  { %1018 = vmatpush.bf16.msrb.mxu0 %v1726_v5  ;;  %148 = vst [vmem:[#allocation1 + $0x2] ss:$4 sm:$0xff] %v103_v27  ;;  %v2105_v46 = vld [vmem:[#allocation6 + $0x324] sm:$0xf0]  ;;  %v1893_v47 = vld [vmem:[#allocation6 + $0x3a0] sm:$0xf]  ;;  %v1766_v51 = vor.u32 %v2089_v43, %v1765_v42 }
  0x45   :  { %1032 = vmatpush.bf16.msrb.mxu1 %v1790_v8  ;;  %149 = vst [vmem:[#allocation1 + $0x3] ss:$4 sm:$0xff] %v105_v32  ;;  %v2121_v48 = vld [vmem:[#allocation6 + $0x3a4] sm:$0xf0]  ;;  %v1693_v50 = vld [vmem:[#allocation6 + $0x210] sm:$0xf]  ;;  %v1830_v52 = vor.u32 %v2105_v46, %v1829_v45 }
  0x46   :  { %1046 = vmatpush.bf16.msrb.mxu2 %v1854_v9  ;;  %v2071_v53 = vld [vmem:[#allocation6 + $0x214] sm:$0xf0]  ;;  %v1757_v54 = vld [vmem:[#allocation6 + $0x290] sm:$0xf]  ;;  %v1894_v56 = vor.u32 %v2121_v48, %v1893_v47  ;;  %v1685_v61 = vld [vmem:[#allocation6 + $0x200] sm:$0xf] }
  0x47   :  { %1060 = vmatpush.bf16.msrb.mxu3 %v1918_v13  ;;  %v2087_v55 = vld [vmem:[#allocation6 + $0x294] sm:$0xf0]  ;;  %v1821_v57 = vld [vmem:[#allocation6 + $0x310] sm:$0xf]  ;;  %v92_v62 = vld [vmem:[#allocation3 + $0x8] sm:$0xff]  ;;  %v1694_v0 = vor.u32 %v2071_v53, %v1693_v50 }
  0x48   :  { %1019 = vmatpush.bf16.msrb.mxu0 %v1718_v20  ;;  %v2103_v58 = vld [vmem:[#allocation6 + $0x314] sm:$0xf0]  ;;  %v1885_v59 = vld [vmem:[#allocation6 + $0x390] sm:$0xf]  ;;  %v2069_v1 = vld [vmem:[#allocation6 + $0x204] sm:$0xf0]  ;;  %v1758_v8 = vor.u32 %v2087_v55, %v1757_v54 }
  0x49   :  { %1033 = vmatpush.bf16.msrb.mxu1 %v1782_v25  ;;  %v2119_v60 = vld [vmem:[#allocation6 + $0x394] sm:$0xf0]  ;;  %v2018_v2 = vld [vmem:[#allocation6 + $0x74] sm:$0xf]  ;;  %131 = vst [vmem:[#allocation1 + $0x20] ss:$4 sm:$0xff] %v92_v62  ;;  %v1822_v17 = vor.u32 %v2103_v58, %v1821_v57  ;;  %v1686_v22 = vor.u32 %v2069_v1, %v1685_v61 }
  0x4a   :  { %1047 = vmatpush.bf16.msrb.mxu2 %v1846_v26  ;;  %v1487_v3 = vld [vmem:[#allocation6 + $0x78] sm:$0xf0]  ;;  %v96_v4 = vld [vmem:[#allocation3 + $0x28] sm:$0xff]  ;;  %133 = vst [vmem:[#allocation1 + $0x21] ss:$4 sm:$0xff] %v94_v63  ;;  %v1886_v18 = vor.u32 %v2119_v60, %v1885_v59 }
  0x4b   :  { %1061 = vmatpush.bf16.msrb.mxu3 %v1910_v31  ;;  %v98_v5 = vld [vmem:[#allocation3 + $0x38] sm:$0xff]  ;;  %v1749_v9 = vld [vmem:[#allocation6 + $0x280] sm:$0xf]  ;;  %v2085_v10 = vld [vmem:[#allocation6 + $0x284] sm:$0xf0]  ;;  %v1490_v25 = vor.u32 %v2018_v2, %v1487_v3 }
  0x4c   :  { %1020 = vmatpush.bf16.msrb.mxu0 %v1710_v37  ;;  %v154_v6 = vld.sshfl [vmem:[#allocation1] sm:$0xff pattern:$0x73625140]  ;;  %v156_v7 = vld.sshfl [vmem:[#allocation1 + $0x10] sm:$0xff pattern:$0x73625140]  ;;  %v1750_v31 = vor.u32 %v2085_v10, %v1749_v9 }
  0x4d   :  { %1034 = vmatpush.bf16.msrb.mxu1 %v1774_v40  ;;  %v1813_v11 = vld [vmem:[#allocation6 + $0x300] sm:$0xf]  ;;  %v2101_v12 = vld [vmem:[#allocation6 + $0x304] sm:$0xf0]  ;;  %v2365_v13 = vpack.c.bf16 %v154_v6, %v138_v33  ;;  %v2367_v14 = vpack.c.bf16 %v156_v7, %v140_v35  ;;  %v2034_v24 = vld [vmem:[#allocation6 + $0xf4] sm:$0xf] }
  0x4e   :  { %1048 = vmatpush.bf16.msrb.mxu2 %v1838_v41  ;;  %v155_v15 = vld.sshfl [vmem:[#allocation1 + $0x8] sm:$0xff pattern:$0x73625140]  ;;  %v157_v16 = vld.sshfl [vmem:[#allocation1 + $0x18] sm:$0xff pattern:$0x73625140]  ;;  %v1814_v32 = vor.u32 %v2101_v12, %v1813_v11 }
  0x4f   :  { %1062 = vmatpush.bf16.msrb.mxu3 %v1902_v44  ;;  %v1877_v19 = vld [vmem:[#allocation6 + $0x380] sm:$0xf]  ;;  %v2370_v20 = vpack.c.bf16 %v155_v15, %v2361_v34  ;;  %v2373_v21 = vpack.c.bf16 %v157_v16, %v2363_v36  ;;  %v2117_v23 = vld [vmem:[#allocation6 + $0x384] sm:$0xf0]  ;;  %135 = vst [vmem:[#allocation1 + $0x22] ss:$4 sm:$0xff] %v96_v4  ;;  %968 = vmatmul.bf16.vlgmr.msra.gmra.mxu0 %v2365_v13 }
  0x50   :  { %1021 = vmatpush.bf16.msrb.mxu0 %v1702_v49  ;;  %996 = vmatmul.bf16.vlgmr.msra.gmra.mxu2 %v2367_v14  ;;  %v1551_v26 = vld [vmem:[#allocation6 + $0xf8] sm:$0xf0]  ;;  %v2050_v27 = vld [vmem:[#allocation6 + $0x174] sm:$0xf]  ;;  %137 = vst [vmem:[#allocation1 + $0x23] ss:$4 sm:$0xff] %v98_v5  ;;  %v1878_v35 = vor.u32 %v2117_v23, %v1877_v19 }
  0x51   :  { %1035 = vmatpush.bf16.msrb.mxu1 %v1766_v51  ;;  %1010 = vmatmul.bf16.vlgmr.msra.gmra.mxu3 %v2373_v21  ;;  %v1615_v28 = vld [vmem:[#allocation6 + $0x178] sm:$0xf0]  ;;  %v2066_v29 = vld [vmem:[#allocation6 + $0x1f4] sm:$0xf]  ;;  %v2016_v33 = vld [vmem:[#allocation6 + $0x64] sm:$0xf]  ;;  %v1554_v36 = vor.u32 %v2034_v24, %v1551_v26 }
  0x52   :  { %1049 = vmatpush.bf16.msrb.mxu2 %v1830_v52  ;;  %982 = vmatmul.bf16.vlgmr.msra.gmra.mxu1 %v2370_v20  ;;  %v1679_v30 = vld [vmem:[#allocation6 + $0x1f8] sm:$0xf0]  ;;  %v1479_v34 = vld [vmem:[#allocation6 + $0x68] sm:$0xf0]  ;;  %v2032_v37 = vld [vmem:[#allocation6 + $0xe4] sm:$0xf]  ;;  %v1618_v38 = vor.u32 %v2050_v27, %v1615_v28 }
  0x53   :  { %1063 = vmatpush.bf16.msrb.mxu3 %v1894_v56  ;;  %v1682_v39 = vor.u32 %v2066_v29, %v1679_v30  ;;  %v100_v40 = vld [vmem:[#allocation3 + $0x48] sm:$0xff]  ;;  %v2048_v42 = vld [vmem:[#allocation6 + $0x164] sm:$0xf]  ;;  %v102_v44 = vld [vmem:[#allocation3 + $0x58] sm:$0xff]  ;;  %v1482_v45 = vor.u32 %v2016_v33, %v1479_v34 }
  0x54   :  { %1022 = vmatpush.bf16.msrb.mxu0 %v1694_v0  ;;  %v1543_v41 = vld [vmem:[#allocation6 + $0xe8] sm:$0xf0]  ;;  %v2064_v46 = vld [vmem:[#allocation6 + $0x1e4] sm:$0xf]  ;;  %v2014_v48 = vld [vmem:[#allocation6 + $0x54] sm:$0xf] }
  0x55   :  { %1036 = vmatpush.bf16.msrb.mxu1 %v1758_v8  ;;  %v1607_v43 = vld [vmem:[#allocation6 + $0x168] sm:$0xf0]  ;;  %v1471_v50 = vld [vmem:[#allocation6 + $0x58] sm:$0xf0]  ;;  %v2030_v51 = vld [vmem:[#allocation6 + $0xd4] sm:$0xf]  ;;  %v1546_v56 = vor.u32 %v2032_v37, %v1543_v41 }
  0x56   :  { %1050 = vmatpush.bf16.msrb.mxu2 %v1822_v17  ;;  %v1671_v47 = vld [vmem:[#allocation6 + $0x1e8] sm:$0xf0]  ;;  %v1535_v52 = vld [vmem:[#allocation6 + $0xd8] sm:$0xf0]  ;;  %v2046_v57 = vld [vmem:[#allocation6 + $0x154] sm:$0xf]  ;;  %v1610_v61 = vor.u32 %v2048_v42, %v1607_v43  ;;  %v1474_v63 = vor.u32 %v2014_v48, %v1471_v50 }
  0x57   :  { %1064 = vmatpush.bf16.msrb.mxu3 %v1886_v18  ;;  %v104_v49 = vld [vmem:[#allocation3 + $0x68] sm:$0xff]  ;;  %v106_v53 = vld [vmem:[#allocation3 + $0x78] sm:$0xff]  ;;  %v1674_v62 = vor.u32 %v2064_v46, %v1671_v47  ;;  %v2062_v0 = vld [vmem:[#allocation6 + $0x1d4] sm:$0xf]  ;;  %v1538_v4 = vor.u32 %v2030_v51, %v1535_v52 }
  0x58   :  { %1023 = vmatpush.bf16.msrb.mxu0 %v1686_v22  ;;  %v142_v54 = vld.sshfl [vmem:[#allocation1 + $0x20] sm:$0xff pattern:$0x73625140]  ;;  %v2379_v55 = vld.sshfl [vmem:[#allocation1 + $0x28] sm:$0xff pattern:$0x73625140] }
  0x59   :  { %1037 = vmatpush.bf16.msrb.mxu1 %v1750_v31  ;;  %v1599_v58 = vld [vmem:[#allocation6 + $0x158] sm:$0xf0]  ;;  %v144_v59 = vld.sshfl [vmem:[#allocation1 + $0x30] sm:$0xff pattern:$0x73625140] }
  0x5a   :  { %1051 = vmatpush.bf16.msrb.mxu2 %v1814_v32  ;;  %v145_v60 = vld.sshfl [vmem:[#allocation1 + $0x38] sm:$0xff pattern:$0x73625140]  ;;  %v1663_v1 = vld [vmem:[#allocation6 + $0x1d8] sm:$0xf0]  ;;  %v1602_v6 = vor.u32 %v2046_v57, %v1599_v58 }
  0x5b   :  { %1065 = vmatpush.bf16.msrb.mxu3 %v1878_v35  ;;  %150 = vst [vmem:[#allocation1 + $0x20] ss:$4 sm:$0xff] %v100_v40  ;;  %v2012_v2 = vld [vmem:[#allocation6 + $0x44] sm:$0xf]  ;;  %v1463_v3 = vld [vmem:[#allocation6 + $0x48] sm:$0xf0]  ;;  %v1666_v7 = vor.u32 %v2062_v0, %v1663_v1 }
  0x5c   :  { %1072 = vmatpush.bf16.msra.mxu0 %v1490_v25  ;;  %151 = vst [vmem:[#allocation1 + $0x21] ss:$4 sm:$0xff] %v102_v44  ;;  %v2028_v5 = vld [vmem:[#allocation6 + $0xc4] sm:$0xf]  ;;  %v1527_v8 = vld [vmem:[#allocation6 + $0xc8] sm:$0xf0]  ;;  %v1466_v10 = vor.u32 %v2012_v2, %v1463_v3 }
  0x5d   :  { %1086 = vmatpush.bf16.msra.mxu1 %v1554_v36  ;;  %152 = vst [vmem:[#allocation1 + $0x22] ss:$4 sm:$0xff] %v104_v49  ;;  %v2044_v9 = vld [vmem:[#allocation6 + $0x144] sm:$0xf]  ;;  %v1591_v11 = vld [vmem:[#allocation6 + $0x148] sm:$0xf0]  ;;  %v1530_v18 = vor.u32 %v2028_v5, %v1527_v8 }
  0x5e   :  { %1100 = vmatpush.bf16.msra.mxu2 %v1618_v38  ;;  %153 = vst [vmem:[#allocation1 + $0x23] ss:$4 sm:$0xff] %v106_v53  ;;  %v2060_v12 = vld [vmem:[#allocation6 + $0x1c4] sm:$0xf]  ;;  %v1655_v15 = vld [vmem:[#allocation6 + $0x1c8] sm:$0xf0]  ;;  %v1594_v19 = vor.u32 %v2044_v9, %v1591_v11 }
  0x5f   :  { %1114 = vmatpush.bf16.msra.mxu3 %v1682_v39  ;;  %v2010_v16 = vld [vmem:[#allocation6 + $0x34] sm:$0xf]  ;;  %v1455_v17 = vld [vmem:[#allocation6 + $0x38] sm:$0xf0]  ;;  %v1658_v22 = vor.u32 %v2060_v12, %v1655_v15  ;;  %v2008_v30 = vld [vmem:[#allocation6 + $0x24] sm:$0xf] }
  0x60   :  { %1073 = vmatpush.bf16.msra.mxu0 %v1482_v45  ;;  %v2026_v23 = vld [vmem:[#allocation6 + $0xb4] sm:$0xf]  ;;  %v1519_v24 = vld [vmem:[#allocation6 + $0xb8] sm:$0xf0]  ;;  %v1458_v25 = vor.u32 %v2010_v16, %v1455_v17  ;;  %v1447_v31 = vld [vmem:[#allocation6 + $0x28] sm:$0xf0] }
  0x61   :  { %1087 = vmatpush.bf16.msra.mxu1 %v1546_v56  ;;  %v2042_v26 = vld [vmem:[#allocation6 + $0x134] sm:$0xf]  ;;  %v1583_v27 = vld [vmem:[#allocation6 + $0x138] sm:$0xf0]  ;;  %v1522_v34 = vor.u32 %v2026_v23, %v1519_v24  ;;  %v2024_v35 = vld [vmem:[#allocation6 + $0xa4] sm:$0xf]  ;;  %v1450_v45 = vor.u32 %v2008_v30, %v1447_v31 }
  0x62   :  { %1101 = vmatpush.bf16.msra.mxu2 %v1610_v61  ;;  %v2058_v28 = vld [vmem:[#allocation6 + $0x1b4] sm:$0xf]  ;;  %v1647_v29 = vld [vmem:[#allocation6 + $0x1b8] sm:$0xf0]  ;;  %v1511_v36 = vld [vmem:[#allocation6 + $0xa8] sm:$0xf0]  ;;  %v1586_v41 = vor.u32 %v2042_v26, %v1583_v27 }
  0x63   :  { %1115 = vmatpush.bf16.msra.mxu3 %v1674_v62  ;;  %v1650_v44 = vor.u32 %v2058_v28, %v1647_v29  ;;  %v2040_v46 = vld [vmem:[#allocation6 + $0x124] sm:$0xf]  ;;  %v1575_v47 = vld [vmem:[#allocation6 + $0x128] sm:$0xf0]  ;;  %v2006_v50 = vld [vmem:[#allocation6 + $0x14] sm:$0xf]  ;;  %v1514_v52 = vor.u32 %v2024_v35, %v1511_v36 }
  0x64   :  { %1074 = vmatpush.bf16.msra.mxu0 %v1474_v63  ;;  %v2056_v48 = vld [vmem:[#allocation6 + $0x1a4] sm:$0xf]  ;;  %v1639_v49 = vld [vmem:[#allocation6 + $0x1a8] sm:$0xf0]  ;;  %v1439_v51 = vld [vmem:[#allocation6 + $0x18] sm:$0xf0]  ;;  %v1578_v53 = vor.u32 %v2040_v46, %v1575_v47 }
  0x65   :  { %1088 = vmatpush.bf16.msra.mxu1 %v1538_v4  ;;  %v158_v32 = vld.sshfl [vmem:[#allocation1 + $0x20] sm:$0xff pattern:$0x73625140]  ;;  %v160_v33 = vld.sshfl [vmem:[#allocation1 + $0x30] sm:$0xff pattern:$0x73625140]  ;;  %v1642_v56 = vor.u32 %v2056_v48, %v1639_v49  ;;  %v1442_v57 = vor.u32 %v2006_v50, %v1439_v51 }
  0x66   :  { %1102 = vmatpush.bf16.msra.mxu2 %v1602_v6  ;;  %v2381_v37 = vpack.c.bf16 %v158_v32, %v142_v54  ;;  %v2383_v38 = vpack.c.bf16 %v160_v33, %v144_v59  ;;  %v159_v39 = vld.sshfl [vmem:[#allocation1 + $0x28] sm:$0xff pattern:$0x73625140]  ;;  %v161_v40 = vld.sshfl [vmem:[#allocation1 + $0x38] sm:$0xff pattern:$0x73625140] }
  0x67   :  { %1116 = vmatpush.bf16.msra.mxu3 %v1666_v7  ;;  %v2386_v42 = vpack.c.bf16 %v159_v39, %v2379_v55  ;;  %v2388_v43 = vpack.c.bf16 %v161_v40, %v145_v60  ;;  %v2022_v54 = vld [vmem:[#allocation6 + $0x94] sm:$0xf]  ;;  %v1503_v55 = vld [vmem:[#allocation6 + $0x98] sm:$0xf0]  ;;  %v2004_v62 = vld [vmem:[#allocation6 + $0x4] sm:$0xf] }
  0x68   :  { %1075 = vmatpush.bf16.msra.mxu0 %v1466_v10  ;;  %1052 = vmatmul.bf16.vlgmr.msrb.gmra.mxu2 %v2383_v38  ;;  %v2038_v58 = vld [vmem:[#allocation6 + $0x114] sm:$0xf]  ;;  %v1567_v59 = vld [vmem:[#allocation6 + $0x118] sm:$0xf0]  ;;  %v1431_v63 = vld [vmem:[#allocation6 + $0x8] sm:$0xf0]  ;;  %v1506_v2 = vor.u32 %v2022_v54, %v1503_v55 }
  0x69   :  { %1089 = vmatpush.bf16.msra.mxu1 %v1530_v18  ;;  %1024 = vmatmul.bf16.vlgmr.msrb.gmra.mxu0 %v2381_v37  ;;  %v2054_v60 = vld [vmem:[#allocation6 + $0x194] sm:$0xf]  ;;  %v1631_v61 = vld [vmem:[#allocation6 + $0x198] sm:$0xf0]  ;;  %v1570_v3 = vor.u32 %v2038_v58, %v1567_v59  ;;  %v2020_v4 = vld [vmem:[#allocation6 + $0x84] sm:$0xf]  ;;  %v1434_v8 = vor.u32 %v2004_v62, %v1431_v63 }
  0x6a   :  { %1103 = vmatpush.bf16.msra.mxu2 %v1594_v19  ;;  %1038 = vmatmul.bf16.vlgmr.msrb.gmra.mxu1 %v2386_v42  ;;  %v2082_v0 = vld [vmem:[#allocation6 + $0x274] sm:$0xf]  ;;  %v1743_v1 = vld [vmem:[#allocation6 + $0x278] sm:$0xf0]  ;;  %v1495_v5 = vld [vmem:[#allocation6 + $0x88] sm:$0xf0]  ;;  %v1634_v7 = vor.u32 %v2054_v60, %v1631_v61 }
  0x6b   :  { %1117 = vmatpush.bf16.msra.mxu3 %v1658_v22  ;;  %v2036_v6 = vld [vmem:[#allocation6 + $0x104] sm:$0xf]  ;;  %v1559_v9 = vld [vmem:[#allocation6 + $0x108] sm:$0xf0]  ;;  %v1746_v12 = vor.u32 %v2082_v0, %v1743_v1  ;;  %v2098_v15 = vld [vmem:[#allocation6 + $0x2f4] sm:$0xf]  ;;  %v1498_v23 = vor.u32 %v2020_v4, %v1495_v5 }
  0x6c   :  { %1076 = vmatpush.bf16.msra.mxu0 %v1458_v25  ;;  %1066 = vmatmul.bf16.vlgmr.msrb.gmra.mxu3 %v2388_v43  ;;  %v2052_v10 = vld [vmem:[#allocation6 + $0x184] sm:$0xf]  ;;  %v1623_v11 = vld [vmem:[#allocation6 + $0x188] sm:$0xf0]  ;;  %v1807_v16 = vld [vmem:[#allocation6 + $0x2f8] sm:$0xf0]  ;;  %v1562_v24 = vor.u32 %v2036_v6, %v1559_v9 }
  0x6d   :  { %1090 = vmatpush.bf16.msra.mxu1 %v1522_v34  ;;  %v2114_v17 = vld [vmem:[#allocation6 + $0x374] sm:$0xf]  ;;  %v1871_v18 = vld [vmem:[#allocation6 + $0x378] sm:$0xf0]  ;;  %v2080_v25 = vld [vmem:[#allocation6 + $0x264] sm:$0xf]  ;;  %v1626_v27 = vor.u32 %v2052_v10, %v1623_v11  ;;  %v1810_v28 = vor.u32 %v2098_v15, %v1807_v16 }
  0x6e   :  { %1104 = vmatpush.bf16.msra.mxu2 %v1586_v41  ;;  %v2130_v19 = vld [vmem:[#allocation6 + $0x3f4] sm:$0xf]  ;;  %v1935_v22 = vld [vmem:[#allocation6 + $0x3f8] sm:$0xf0]  ;;  %v1735_v26 = vld [vmem:[#allocation6 + $0x268] sm:$0xf0]  ;;  %v1874_v29 = vor.u32 %v2114_v17, %v1871_v18 }
  0x6f   :  { %1118 = vmatpush.bf16.msra.mxu3 %v1650_v44  ;;  %v1938_v30 = vor.u32 %v2130_v19, %v1935_v22  ;;  %v2096_v31 = vld [vmem:[#allocation6 + $0x2e4] sm:$0xf]  ;;  %v1799_v32 = vld [vmem:[#allocation6 + $0x2e8] sm:$0xf0]  ;;  %v1738_v34 = vor.u32 %v2080_v25, %v1735_v26  ;;  %v2078_v40 = vld [vmem:[#allocation6 + $0x254] sm:$0xf] }
  0x70   :  { %1077 = vmatpush.bf16.msra.mxu0 %v1450_v45  ;;  %v2112_v33 = vld [vmem:[#allocation6 + $0x364] sm:$0xf]  ;;  %v1863_v35 = vld [vmem:[#allocation6 + $0x368] sm:$0xf0]  ;;  %v1727_v41 = vld [vmem:[#allocation6 + $0x258] sm:$0xf0]  ;;  %v1802_v44 = vor.u32 %v2096_v31, %v1799_v32 }
  0x71   :  { %1091 = vmatpush.bf16.msra.mxu1 %v1514_v52  ;;  %v2128_v36 = vld [vmem:[#allocation6 + $0x3e4] sm:$0xf]  ;;  %v1927_v39 = vld [vmem:[#allocation6 + $0x3e8] sm:$0xf0]  ;;  %v1866_v45 = vor.u32 %v2112_v33, %v1863_v35  ;;  %v2094_v47 = vld [vmem:[#allocation6 + $0x2d4] sm:$0xf]  ;;  %v1730_v50 = vor.u32 %v2078_v40, %v1727_v41 }
  0x72   :  { %1105 = vmatpush.bf16.msra.mxu2 %v1578_v53  ;;  %v1930_v46 = vor.u32 %v2128_v36, %v1927_v39  ;;  %v1791_v48 = vld [vmem:[#allocation6 + $0x2d8] sm:$0xf0]  ;;  %v2110_v49 = vld [vmem:[#allocation6 + $0x354] sm:$0xf]  ;;  %v2076_v54 = vld [vmem:[#allocation6 + $0x244] sm:$0xf] }
  0x73   :  { %1119 = vmatpush.bf16.msra.mxu3 %v1642_v56  ;;  %v1855_v51 = vld [vmem:[#allocation6 + $0x358] sm:$0xf0]  ;;  %v2126_v52 = vld [vmem:[#allocation6 + $0x3d4] sm:$0xf]  ;;  %v1719_v55 = vld [vmem:[#allocation6 + $0x248] sm:$0xf0]  ;;  %v1794_v56 = vor.u32 %v2094_v47, %v1791_v48 }
  0x74   :  { %1078 = vmatpush.bf16.msra.mxu0 %v1442_v57  ;;  %v1919_v53 = vld [vmem:[#allocation6 + $0x3d8] sm:$0xf0]  ;;  %v1858_v57 = vor.u32 %v2110_v49, %v1855_v51  ;;  %v2092_v59 = vld [vmem:[#allocation6 + $0x2c4] sm:$0xf]  ;;  %v1783_v60 = vld [vmem:[#allocation6 + $0x2c8] sm:$0xf0] }
  0x75   :  { %1092 = vmatpush.bf16.msra.mxu1 %v1506_v2  ;;  %v1922_v58 = vor.u32 %v2126_v52, %v1919_v53  ;;  %v2108_v61 = vld [vmem:[#allocation6 + $0x344] sm:$0xf]  ;;  %v1847_v62 = vld [vmem:[#allocation6 + $0x348] sm:$0xf0]  ;;  %v2074_v0 = vld [vmem:[#allocation6 + $0x234] sm:$0xf]  ;;  %v1786_v1 = vor.u32 %v2092_v59, %v1783_v60 }
  0x76   :  { %1106 = vmatpush.bf16.msra.mxu2 %v1570_v3  ;;  %v2124_v63 = vld [vmem:[#allocation6 + $0x3c4] sm:$0xf]  ;;  %v1850_v2 = vor.u32 %v2108_v61, %v1847_v62  ;;  %v2090_v4 = vld [vmem:[#allocation6 + $0x2b4] sm:$0xf]  ;;  %v1775_v5 = vld [vmem:[#allocation6 + $0x2b8] sm:$0xf0] }
  0x77   :  { %1120 = vmatpush.bf16.msra.mxu3 %v1634_v7  ;;  %v2106_v6 = vld [vmem:[#allocation6 + $0x334] sm:$0xf]  ;;  %v2072_v10 = vld [vmem:[#allocation6 + $0x224] sm:$0xf]  ;;  %v1703_v11 = vld [vmem:[#allocation6 + $0x228] sm:$0xf0] }
  0x78   :  { %1079 = vmatpush.bf16.msra.mxu0 %v1434_v8  ;;  %v1839_v8 = vld [vmem:[#allocation6 + $0x338] sm:$0xf0]  ;;  %v2122_v9 = vld [vmem:[#allocation6 + $0x3b4] sm:$0xf]  ;;  %v2088_v17 = vld [vmem:[#allocation6 + $0x2a4] sm:$0xf]  ;;  %v1706_v22 = vor.u32 %v2072_v10, %v1703_v11 }
  0x79   :  { %1093 = vmatpush.bf16.msra.mxu1 %v1498_v23  ;;  %v1842_v15 = vor.u32 %v2106_v6, %v1839_v8  ;;  %v1767_v18 = vld [vmem:[#allocation6 + $0x2a8] sm:$0xf0]  ;;  %v2104_v19 = vld [vmem:[#allocation6 + $0x324] sm:$0xf]  ;;  %v2070_v26 = vld [vmem:[#allocation6 + $0x214] sm:$0xf] }
  0x7a   :  { %1107 = vmatpush.bf16.msra.mxu2 %v1562_v24  ;;  %v1831_v23 = vld [vmem:[#allocation6 + $0x328] sm:$0xf0]  ;;  %v2120_v24 = vld [vmem:[#allocation6 + $0x3a4] sm:$0xf]  ;;  %v2086_v31 = vld [vmem:[#allocation6 + $0x294] sm:$0xf] }
  0x7b   :  { %1121 = vmatpush.bf16.msra.mxu3 %v1626_v27  ;;  %1080 = vmatmul.bf16.vlgmr.msra.gmra.mxu0 %v2365_v13  ;;  %v1911_v13 = vld [vmem:[#allocation6 + $0x3c8] sm:$0xf0]  ;;  %v1695_v27 = vld [vmem:[#allocation6 + $0x218] sm:$0xf0]  ;;  %v2102_v33 = vld [vmem:[#allocation6 + $0x314] sm:$0xf] }
  0x7c   :  { %1128 = vmatpush.bf16.msrb.mxu0 %v1746_v12  ;;  %1094 = vmatmul.bf16.vlgmr.msra.gmra.mxu1 %v2370_v20  ;;  %v1914_v3 = vor.u32 %v2124_v63, %v1911_v13  ;;  %v1903_v20 = vld [vmem:[#allocation6 + $0x3b8] sm:$0xf0]  ;;  %v1778_v12 = vor.u32 %v2090_v4, %v1775_v5  ;;  %v1895_v25 = vld [vmem:[#allocation6 + $0x3a8] sm:$0xf0]  ;;  %v2118_v36 = vld [vmem:[#allocation6 + $0x394] sm:$0xf] }
  0x7d   :  { %1142 = vmatpush.bf16.msrb.mxu1 %v1810_v28  ;;  %1108 = vmatmul.bf16.vlgmr.msra.gmra.mxu2 %v2367_v14  ;;  %v1722_v14 = vor.u32 %v2076_v54, %v1719_v55  ;;  %v1906_v16 = vor.u32 %v2122_v9, %v1903_v20  ;;  %v1770_v28 = vor.u32 %v2088_v17, %v1767_v18  ;;  %v1759_v32 = vld [vmem:[#allocation6 + $0x298] sm:$0xf0]  ;;  %v2068_v40 = vld [vmem:[#allocation6 + $0x204] sm:$0xf]  ;;  %v1687_v41 = vld [vmem:[#allocation6 + $0x208] sm:$0xf0] }
  0x7e   :  { %1156 = vmatpush.bf16.msrb.mxu2 %v1874_v29  ;;  %1122 = vmatmul.bf16.vlgmr.msra.gmra.mxu3 %v2373_v21  ;;  %v1711_v21 = vld [vmem:[#allocation6 + $0x238] sm:$0xf0]  ;;  %v1834_v29 = vor.u32 %v2104_v19, %v1831_v23  ;;  %v2084_v47 = vld [vmem:[#allocation6 + $0x284] sm:$0xf]  ;;  %v1751_v48 = vld [vmem:[#allocation6 + $0x288] sm:$0xf0] }
  0x7f   :  { %1170 = vmatpush.bf16.msrb.mxu3 %v1938_v30  ;;  %v1714_v7 = vor.u32 %v2074_v0, %v1711_v21  ;;  %v1898_v30 = vor.u32 %v2120_v24, %v1895_v25  ;;  %v1823_v35 = vld [vmem:[#allocation6 + $0x318] sm:$0xf0]  ;;  %v2100_v49 = vld [vmem:[#allocation6 + $0x304] sm:$0xf]  ;;  %v1815_v51 = vld [vmem:[#allocation6 + $0x308] sm:$0xf0]  ;;  %v1754_v54 = vor.u32 %v2084_v47, %v1751_v48 }
  0x80   :  { %1129 = vmatpush.bf16.msrb.mxu0 %v1738_v34  ;;  %v1698_v34 = vor.u32 %v2070_v26, %v1695_v27  ;;  %v1887_v39 = vld [vmem:[#allocation6 + $0x398] sm:$0xf0]  ;;  %v2116_v52 = vld [vmem:[#allocation6 + $0x384] sm:$0xf]  ;;  %v1879_v53 = vld [vmem:[#allocation6 + $0x388] sm:$0xf0]  ;;  %v1818_v55 = vor.u32 %v2100_v49, %v1815_v51 }
  0x81   :  { %1143 = vmatpush.bf16.msrb.mxu1 %v1802_v44  ;;  %v1762_v44 = vor.u32 %v2086_v31, %v1759_v32  ;;  %v2137_v59 = vld [vmem:[#allocation8 + $0x28] sm:$0xff]  ;;  %v2136_v60 = vld [vmem:[#allocation8 + $0x20] sm:$0xff]  ;;  %v2135_v61 = vld [vmem:[#allocation8 + $0x18] sm:$0xff] }
  0x82   :  { %1157 = vmatpush.bf16.msrb.mxu2 %v1866_v45  ;;  %v1826_v45 = vor.u32 %v2102_v33, %v1823_v35  ;;  %v2133_v62 = vld [vmem:[#allocation8 + $0x8] sm:$0xff]  ;;  %v2132_v21 = vld [vmem:[#allocation8] sm:$0xff] }
  0x83   :  { %1171 = vmatpush.bf16.msrb.mxu3 %v1930_v46  ;;  %v1890_v46 = vor.u32 %v2118_v36, %v1887_v39  ;;  %v2145_v32 = vld [vmem:[#allocation8 + $0x68] sm:$0xff]  ;;  %v2144_v35 = vld [vmem:[#allocation8 + $0x60] sm:$0xff] }
  0x84   :  { %1130 = vmatpush.bf16.msrb.mxu0 %v1730_v50  ;;  %v1690_v50 = vor.u32 %v2068_v40, %v1687_v41 }
  0x85   :  { %1144 = vmatpush.bf16.msrb.mxu1 %v1794_v56  ;;  %v1882_v56 = vor.u32 %v2116_v52, %v1879_v53  ;;  %v2141_v53 = vld [vmem:[#allocation8 + $0x48] sm:$0xff] }
  0x86   :  { %1158 = vmatpush.bf16.msrb.mxu2 %v1858_v57  ;;  %v2139_v57 = vld [vmem:[#allocation8 + $0x38] sm:$0xff] }
  0x87   :  { %1172 = vmatpush.bf16.msrb.mxu3 %v1922_v58  ;;  %v2138_v58 = vld [vmem:[#allocation8 + $0x30] sm:$0xff] }
  0x88   :  { %1131 = vmatpush.bf16.msrb.mxu0 %v1722_v14 }
  0x89   :  { %1145 = vmatpush.bf16.msrb.mxu1 %v1786_v1 }
  0x8a   :  { %1159 = vmatpush.bf16.msrb.mxu2 %v1850_v2 }
  0x8b   :  { %1173 = vmatpush.bf16.msrb.mxu3 %v1914_v3 }
  0x8c   :  { %1132 = vmatpush.bf16.msrb.mxu0 %v1714_v7 }
  0x8d   :  { %1146 = vmatpush.bf16.msrb.mxu1 %v1778_v12 }
  0x8e   :  { %1160 = vmatpush.bf16.msrb.mxu2 %v1842_v15  ;;  %v2147_v15 = vld [vmem:[#allocation8 + $0x78] sm:$0xff] }
  0x8f   :  { %1174 = vmatpush.bf16.msrb.mxu3 %v1906_v16  ;;  %v2146_v16 = vld [vmem:[#allocation8 + $0x70] sm:$0xff] }
  0x90   :  { %1133 = vmatpush.bf16.msrb.mxu0 %v1706_v22 }
  0x91   :  { %1147 = vmatpush.bf16.msrb.mxu1 %v1770_v28 }
  0x92   :  { %1161 = vmatpush.bf16.msrb.mxu2 %v1834_v29 }
  0x93   :  { %1175 = vmatpush.bf16.msrb.mxu3 %v1898_v30 }
  0x94   :  { %1134 = vmatpush.bf16.msrb.mxu0 %v1698_v34 }
  0x95   :  { %1148 = vmatpush.bf16.msrb.mxu1 %v1762_v44 }
  0x96   :  { %1162 = vmatpush.bf16.msrb.mxu2 %v1826_v45  ;;  %v2143_v45 = vld [vmem:[#allocation8 + $0x58] sm:$0xff] }
  0x97   :  { %1176 = vmatpush.bf16.msrb.mxu3 %v1890_v46  ;;  %v2142_v46 = vld [vmem:[#allocation8 + $0x50] sm:$0xff] }
  0x98   :  { %1135 = vmatpush.bf16.msrb.mxu0 %v1690_v50 }
  0x99   :  { %1149 = vmatpush.bf16.msrb.mxu1 %v1754_v54  ;;  %v2140_v54 = vld [vmem:[#allocation8 + $0x40] sm:$0xff] }
  0x9a   :  { %1163 = vmatpush.bf16.msrb.mxu2 %v1818_v55 }
  0x9b   :  { %1177 = vmatpush.bf16.msrb.mxu3 %v1882_v56  ;;  %1136 = vmatmul.bf16.vlgmr.msrb.gmra.mxu0 %v2381_v37  ;;  %v2405_v37 = vld [vmem:[%s2417_s2] sm:$0x3] }
  0x9c   :  { %1150 = vmatmul.bf16.vlgmr.msrb.gmra.mxu1 %v2386_v42  ;;  %1330 = vmatpush.bf16.msra.mxu0 %v2139_v57  ;;  %v2134_v42 = vld [vmem:[#allocation8 + $0x10] sm:$0xff]  ;;  %v317_v48 = vperm.slane %v2405_v37, 1 }
  0x9d   :  { %1164 = vmatmul.bf16.vlgmr.msrb.gmra.mxu2 %v2383_v38  ;;  %v316_v38 = vperm.slane %v2405_v37, 0  ;;  %1344 = vmatpush.bf16.msra.mxu1 %v2147_v15 }
  0x9e   :  { %1178 = vmatmul.bf16.vlgmr.msrb.gmra.mxu3 %v2388_v43 }
  0xa0   :  { %1331 = vmatpush.bf16.msra.mxu0 %v2138_v58 }
  0xa1   :  { %1345 = vmatpush.bf16.msra.mxu1 %v2146_v16  ;;  %v1379_v16 = vld [vmem:[#allocation2] sm:$0x1] }
  0xa4   :  { %1332 = vmatpush.bf16.msra.mxu0 %v2137_v59 }
  0xa5   :  { %1346 = vmatpush.bf16.msra.mxu1 %v2145_v32 }
  0xa8   :  { %1333 = vmatpush.bf16.msra.mxu0 %v2136_v60 }
  0xa9   :  { %1347 = vmatpush.bf16.msra.mxu1 %v2144_v35 }
  0xac   :  { %1334 = vmatpush.bf16.msra.mxu0 %v2135_v61 }
  0xad   :  { %1348 = vmatpush.bf16.msra.mxu1 %v2143_v45 }
  0xb0   :  { %1335 = vmatpush.bf16.msra.mxu0 %v2134_v42 }
  0xb1   :  { %1349 = vmatpush.bf16.msra.mxu1 %v2142_v46 }
  0xb4   :  { %1336 = vmatpush.bf16.msra.mxu0 %v2133_v62 }
  0xb5   :  { %1350 = vmatpush.bf16.msra.mxu1 %v2141_v53 }
  0xb8   :  { %1337 = vmatpush.bf16.msra.mxu0 %v2132_v21 }
  0xb9   :  { %1351 = vmatpush.bf16.msra.mxu1 %v2140_v54 }
  0xcc   :  { %v969_v14 = vpop.f32.mrf.mxu0 }
  0xcd   :  { %v970_v63 = vadd.f32 %v969_v14, %v316_v38 }
  0xcf   :  { %v983_v43 = vpop.f32.mrf.mxu1 }
  0xd0   :  { %v984_v1 = vadd.f32 %v983_v43, %v970_v63 }
  0xd3   :  { %v997_v13 = vpop.f32.mrf.mxu2 }
  0xd4   :  { %v1011_v0 = vpop.f32.mrf.mxu3  ;;  %v971_v2 = vpop.f32.mrf.mxu0  ;;  %v998_v4 = vadd.f32 %v997_v13, %v984_v1 }
  0xd5   :  { %v972_v5 = vadd.f32 %v971_v2, %v316_v38 }
  0xd6   :  { %v1012_v7 = vadd.f32 %v1011_v0, %v998_v4 }
  0xd7   :  { %v985_v3 = vpop.f32.mrf.mxu1 }
  0xd8   :  { %v986_v8 = vadd.f32 %v985_v3, %v972_v5 }
  0xdb   :  { %v999_v6 = vpop.f32.mrf.mxu2 }
  0xdc   :  { %v1013_v9 = vpop.f32.mrf.mxu3  ;;  %v1000_v10 = vadd.f32 %v999_v6, %v986_v8 }
  0xde   :  { %v1014_v17 = vadd.f32 %v1013_v9, %v1000_v10 }
  0xe6   :  { %v1025_v20 = vpop.f32.mrf.mxu0 }
  0xe7   :  { %v1026_v11 = vadd.f32 %v1025_v20, %v1012_v7  ;;  %v1039_v12 = vpop.f32.mrf.mxu1 }
  0xe9   :  { %v1040_v18 = vadd.f32 %v1039_v12, %v1026_v11 }
  0xeb   :  { %v1053_v19 = vpop.f32.mrf.mxu2 }
  0xec   :  { %v1054_v24 = vadd.f32 %v1053_v19, %v1040_v18  ;;  %v2161_v19 = vld [vmem:[#allocation9] ss:$0 sm:$0xff] }
  0xee   :  { %v1027_v23 = vpop.f32.mrf.mxu0 }
  0xef   :  { %v1067_v22 = vpop.f32.mrf.mxu3  ;;  %v1028_v25 = vadd.f32 %v1027_v23, %v1014_v17  ;;  %v1041_v26 = vpop.f32.mrf.mxu1  ;;  %v2304_v17 = vmov 0  }
  0xf0   :  { %v1068_v27 = vadd.f32 %v1067_v22, %v1054_v24  ;;  %2160 = vset.pattern.permute.xlu0 %v2304_v17 }
  0xf1   :  { %v1042_v28 = vadd.f32 %v1041_v26, %v1028_v25  ;;  %1382 = vperm.xlu0 %2160, %v1379_v16  }
  0xf2   :  { %v1188_v33 = vmul.f32 0.2, %v1068_v27  ;;  %vm1184_vm0 = vcmp.gt.f32.partialorder %v1068_v27, 0.0 }
  0xf3   :  { %v1055_v29 = vpop.f32.mrf.mxu2 }
  0xf4   :  { %v1056_v30 = vadd.f32 %v1055_v29, %v1042_v28  ;;  %v1192_v39 = vsel %vm1184_vm0, %v1068_v27, %v1188_v33 }
  0xf7   :  { %v1069_v31 = vpop.f32.mrf.mxu3 }
  0xf8   :  { %v1070_v34 = vadd.f32 %v1069_v31, %v1056_v30  ;;  %v1081_v44 = vpop.f32.mrf.mxu0 }
  0xf9   :  { %v1095_v47 = vpop.f32.mrf.mxu1  ;;  %v1082_v51 = vadd.f32 %v1081_v44, %v317_v48 }
  0xfa   :  { %vm1186_vm1 = vcmp.gt.f32.partialorder %v1070_v34, 0.0  ;;  %v1190_v36 = vmul.f32 0.2, %v1070_v34 }
  0xfb   :  { %v1096_v55 = vadd.f32 %v1095_v47, %v1082_v51 }
  0xfc   :  { %v1194_v40 = vsel %vm1186_vm1, %v1070_v34, %v1190_v36  ;;  %v1364_v34 = vld [vmem:[%s2420_s5] sm:$0xf]  ;;  %s1413_s5 = sshll.u32 %s2305_s27, 4  ;;  %s1414_s5 = int_to_ptr.vmem [resolvable:$true] %s1413_s5 }
  0xfd   :  { %v1196_v41 = vpack.c.bf16 %v1194_v40, %v1192_v39 }
  0xff   :  { %1338 = vmatmul.bf16.vlgmr.msra.gmra.mxu0 %v1196_v41 }
 0x100   :  { %v1109_v49 = vpop.f32.mrf.mxu2  ;;  %v1083_v52 = vpop.f32.mrf.mxu0 }
 0x101   :  { %v1123_v50 = vpop.f32.mrf.mxu3  ;;  %v1097_v56 = vpop.f32.mrf.mxu1  ;;  %v1084_v57 = vadd.f32 %v1083_v52, %v317_v48  ;;  %v1110_v58 = vadd.f32 %v1109_v49, %v1096_v55 }
 0x103   :  { %v1098_v42 = vadd.f32 %v1097_v56, %v1084_v57  ;;  %v1124_v14 = vadd.f32 %v1123_v50, %v1110_v58 }
 0x108   :  { %v1111_v59 = vpop.f32.mrf.mxu2 }
 0x109   :  { %v1125_v60 = vpop.f32.mrf.mxu3  ;;  %v1112_v37 = vadd.f32 %v1111_v59, %v1098_v42 }
 0x10b   :  { %v1126_v13 = vadd.f32 %v1125_v60, %v1112_v37 }
 0x118   :  { %v1137_v61 = vpop.f32.mrf.mxu0 }
 0x119   :  { %v1151_v38 = vpop.f32.mrf.mxu1  ;;  %v1138_v43 = vadd.f32 %v1137_v61, %v1124_v14 }
 0x11b   :  { %v1152_v0 = vadd.f32 %v1151_v38, %v1138_v43 }
 0x120   :  { %v1165_v62 = vpop.f32.mrf.mxu2  ;;  %v1139_v21 = vpop.f32.mrf.mxu0 }
 0x121   :  { %v1179_v63 = vpop.f32.mrf.mxu3  ;;  %v1166_v1 = vadd.f32 %v1165_v62, %v1152_v0  ;;  %v1140_v2 = vadd.f32 %v1139_v21, %v1126_v13  ;;  %v1153_v3 = vpop.f32.mrf.mxu1 }
 0x123   :  { %v1180_v4 = vadd.f32 %v1179_v63, %v1166_v1  ;;  %v1154_v5 = vadd.f32 %v1153_v3, %v1140_v2 }
 0x125   :  { %v1189_v9 = vmul.f32 0.2, %v1180_v4  ;;  %vm1185_vm2 = vcmp.gt.f32.partialorder %v1180_v4, 0.0 }
 0x127   :  { %v1193_v11 = vsel %vm1185_vm2, %v1180_v4, %v1189_v9 }
 0x128   :  { %v1167_v6 = vpop.f32.mrf.mxu2 }
 0x129   :  { %v1168_v7 = vadd.f32 %v1167_v6, %v1154_v5  ;;  %v1181_v8 = vpop.f32.mrf.mxu3 }
 0x12b   :  { %v1182_v20 = vadd.f32 %v1181_v8, %v1168_v7 }
 0x12d   :  { %vm1187_vm3 = vcmp.gt.f32.partialorder %v1182_v20, 0.0  ;;  %v1191_v10 = vmul.f32 0.2, %v1182_v20 }
 0x12f   :  { %v1195_v12 = vsel %vm1187_vm3, %v1182_v20, %v1191_v10 }
 0x130   :  { %v1197_v15 = vpack.c.bf16 %v1195_v12, %v1193_v11 }
 0x132   :  { %1352 = vmatmul.bf16.vlgmr.msra.gmra.mxu1 %v1197_v15 }
 0x163   :  { %v1383_v35 = vpop.permute.xlu0 %1382 }
 0x164   :  { %v1385_v36 = vperm.slane %v1383_v35, 0 }
 0x17c   :  { %v1339_v18 = vpop.f32.mrf.mxu0 }
 0x17d   :  { %v1340_v23 = vadd.f32 %v2161_v19, %v1339_v18 }
 0x184   :  { %v1341_v24 = vpop.f32.mrf.mxu0 }
 0x185   :  { %v1342_v26 = vadd.f32 %v2161_v19, %v1341_v24 }
 0x1af   :  { %v1353_v22 = vpop.f32.mrf.mxu1 }
 0x1b0   :  { %v1354_v25 = vadd.f32 %v1353_v22, %v1340_v23 }
 0x1b2   :  { %v1360_v28 = vmul.f32 0.2, %v1354_v25  ;;  %vm1358_vm4 = vcmp.gt.f32.partialorder %v1354_v25, 0.0 }
 0x1b4   :  { %v1362_v31 = vsel %vm1358_vm4, %v1354_v25, %v1360_v28 }
 0x1b7   :  { %v1355_v27 = vpop.f32.mrf.mxu1 }
 0x1b8   :  { %v1356_v29 = vadd.f32 %v1355_v27, %v1342_v26 }
 0x1ba   :  { %vm1359_vm5 = vcmp.gt.f32.partialorder %v1356_v29, 0.0  ;;  %v1361_v30 = vmul.f32 0.2, %v1356_v29 }
 0x1bc   :  { %v1363_v32 = vsel %vm1359_vm5, %v1356_v29, %v1361_v30 }
 0x1bd   :  { %v1365_v33 = vpack.c.bf16 %v1363_v32, %v1362_v31 }
 0x1bf   :  { %1373 = vmatpush.bf16.xpose.msra.mxu2 %v1365_v33 }
 0x1c6   :  { %1374 = vmatmul.bf16.vlgmr.msra.gmra.mxu2 %v1364_v34 }
 0x249   :  { %v1375_v39 = vpop.f32.mrf.mxu2 }
 0x24a   :  { %v1386_v40 = vadd.f32 %v1385_v36, %v1375_v39 }
 0x24c   :  { %v2003_v41 = vmul.f32 -1.442695, %v1386_v40 }
 0x24e   :  { %2162 = vpow2.f32 %v2003_v41 }
 0x251   :  { %v1377_v44 = vpop.f32.mrf.mxu2 }
 0x254   :  { %v2163_v45 = vpop.eup %2162 }
 0x255   :  { %v1390_v46 = vadd.f32 1.0, %v2163_v45 }
 0x257   :  { %2164 = vrcp.f32 %v1390_v46  ;;  %v1402_v50 = vand.u32 2147483648, %v1390_v46  ;;  %v1400_v52 = vand.u32 2147483647, %v1390_v46  ;;  %vm1396_vm7 = vweird.f32 %v1390_v46 }
 0x259   :  { %v1403_v54 = vor.u32 1.1754944e-38, %v1402_v50  ;;  %vm1401_vm10 = vcmp.eq.f32.partialorder %v1400_v52, 8.507059e+37 }
 0x25d   :  { %v2165_v47 = vpop.eup %2164 }
 0x25e   :  { %v1392_v48 = vmul.f32 %v2165_v47, %v1390_v46  ;;  %vm1397_vm6 = vweird.f32 %v2165_v47 }
 0x25f   :  { %vm1398_vm8 = vmor %vm1396_vm7, %vm1397_vm6 }
 0x260   :  { %v1393_v49 = vsub.f32 1.0, %v1392_v48 }
 0x262   :  { %v1394_v51 = vmul.f32 %v2165_v47, %v1393_v49 }
 0x264   :  { %v1395_v53 = vadd.f32 %v2165_v47, %v1394_v51 }
 0x266   :  { %v1399_v55 = vsel %vm1398_vm8, %v2165_v47, %v1395_v53 }
 0x267   :  { %v1404_v56 = vsel %vm1401_vm10, %v1403_v54, %v1399_v55 }
 0x268   :  { %1407 = vst.msk [vmem:[#allocation11] sm:$0x1] %vm1406_vm9, %v1404_v56 }
 0x269   :  { %1418 = dma.vmem_to_hbm [thread:$0]  %s1414_s5, 16, %s1416_s30, [#allocation5]  }
 0x26a   :  { %2292 = dma.done.wait [#allocation5], 16  }
 0x26b   :  { %2293 = vsyncadd [#allocation5], 4294967280 }
 0x26c   :  { %1423 = vsyncpa [#allocation4], 1 }
 0x26d   :  { %1424 = vsyncpa [#allocation7], 1 }
 0x26e   :  { %1425 = vsyncpa [#allocation10], 1 }
 0x26f   :  { %1426 = vsyncpa [#allocation5], 1 }

</bundles_post_ra>
